<compile_context>
chip_gen: v5e
topology: v5e:2x2
jax: 0.10.0
libtpu: 0.0.40
codegen_flags: <defaults>
</compile_context>

<pallas_src>
import functools

import numpy as np
import jax
import jax.numpy as jnp
from jax.experimental import pallas as pl
from jax.experimental.pallas import tpu as pltpu


def _ceil_div(a, b):
    return -((-a) // b)


def _conv_bn_relu_kernel(x_ref, b_ref, fold_ref, expand_ref, gamma_ref,
                         beta_ref, o_ref, lhs_ref,
                         *, stride, padding, dilation, eps):
    """Conv2d(bias=False) + BatchNorm2d(batch stats) + ReLU, one grid step.

    x_ref:      (N, Cin, H, W)        caller's NCHW activation (f32)
    b_ref:      (Cin*KH*W, Wo*Cout)   structured conv weight (KW taps and the
                                      W-direction zero padding folded in)
    fold_ref:   (Wo*Cout, Cout)       one-hot lane->channel matrix / (N*Ho*Wo)
    expand_ref: (Cout, Wo*Cout)       one-hot channel->lane matrix
    gamma_ref:  (1, Cout)             BN weight
    beta_ref:   (1, Cout)             BN bias
    o_ref:      (N*Ho, Wo*Cout)       lane-dense output slab
    lhs_ref:    (N, Ho, Cin*KH*W)     VMEM scratch holding the im2col LHS
    """
    N, Cin, H, W = x_ref.shape
    Cout = gamma_ref.shape[1]
    Ho = o_ref.shape[0] // N
    KH = b_ref.shape[0] // (Cin * W)

    # ---- assemble the im2col LHS in a zero-initialised VMEM scratch --------
    # Scratch / B-row lane layout: (ci, kh, w), w minor.  Output rows whose
    # source line ho*stride + kh*dilation - padding falls outside [0, H) are
    # simply left at zero == implicit H zero-padding.
    lhs_ref[...] = jnp.zeros_like(lhs_ref)
    x = x_ref[...]
    for ci in range(Cin):
        for kh in range(KH):
            ho_lo = max(0, _ceil_div(padding - kh * dilation, stride))
            ho_hi = min(Ho, (H - 1 + padding - kh * dilation) // stride + 1)
            nv = ho_hi - ho_lo
            if nv <= 0:
                continue
            r_lo = ho_lo * stride + kh * dilation - padding
            src = x[:, ci, r_lo:r_lo + (nv - 1) * stride + 1:stride, :]
            t = ci * KH + kh
            lhs_ref[:, ho_lo:ho_hi, t * W:(t + 1) * W] = src.astype(lhs_ref.dtype)

    # ---- convolution: ONE MXU matmul producing a lane-dense slab -----------
    lhs = lhs_ref[...].reshape(N * Ho, Cin * KH * W)
    acc = jnp.dot(lhs, b_ref[...], preferred_element_type=jnp.float32)

    # ---- BatchNorm2d: single-pass biased batch statistics ------------------
    s_lane = jnp.sum(acc, axis=0, keepdims=True)           # (1, Wo*Cout)
    q_lane = jnp.sum(acc * acc, axis=0, keepdims=True)     # (1, Wo*Cout)
    mean = jnp.dot(s_lane, fold_ref[...],
                   preferred_element_type=jnp.float32)      # (1, Cout) = E[y]
    msq = jnp.dot(q_lane, fold_ref[...],
                  preferred_element_type=jnp.float32)       # (1, Cout) = E[y^2]
    var = jnp.maximum(msq - mean * mean, 0.0)               # biased batch var
    scale = gamma_ref[...] * jax.lax.rsqrt(var + eps)       # (1, Cout)
    shift = beta_ref[...] - mean * scale                    # (1, Cout)
    # Broadcast the per-channel affine back to the (wo, co) lane layout.
    scale_l = jnp.dot(scale, expand_ref[...],
                      preferred_element_type=jnp.float32)   # (1, Wo*Cout)
    shift_l = jnp.dot(shift, expand_ref[...],
                      preferred_element_type=jnp.float32)   # (1, Wo*Cout)

    # ---- affine + ReLU; full 128-lane unmasked stores -----------------------
    o_ref[...] = jnp.maximum(acc * scale_l + shift_l, 0.0).astype(o_ref.dtype)


def conv_bn_relu(x_nchw, weight_oihw, gamma, beta, *, stride=1, padding=0,
                 dilation=1, eps=1e-5, use_bf16_matmul=False):
    """Forward of ConvBnRelu: (N, Cin, H, W) f32 -> (N, Cout, Ho, Wo) f32."""
    # TODO(synk): groups > 1 not implemented (module default groups=1).
    N, Cin, H, W = x_nchw.shape
    Cout, _, KH, KW = weight_oihw.shape
    Ho = (H + 2 * padding - dilation * (KH - 1) - 1) // stride + 1
    Wo = (W + 2 * padding - dilation * (KW - 1) - 1) // stride + 1

    # Structured conv weight: fold the KW taps and the W-direction zero
    # padding into a single (Cin*KH*W, Wo*Cout) matrix so the whole conv is
    # one matmul whose output lane axis (wo, co) is already dense.
    #   B[ci, kh, w, wo, co] = sum_kw [w == wo*stride + kw*dilation - padding]
    #                                 * weight[co, ci, kh, kw]
    kw_i = np.arange(KW)[:, None, None]
    w_i = np.arange(W)[None, :, None]
    wo_i = np.arange(Wo)[None, None, :]
    ind = jnp.asarray(w_i == wo_i * stride + kw_i * dilation - padding,
                      dtype=jnp.float32)                                # (KW, W, Wo)
    w_ihkc = jnp.transpose(weight_oihw.astype(jnp.float32), (1, 2, 3, 0))  # (Cin,KH,KW,Cout)
    b = jnp.sum(w_ihkc[:, :, :, None, None, :] *
                ind[None, None, :, :, :, None], axis=2)                 # (Cin,KH,W,Wo,Cout)
    b = b.reshape(Cin * KH * W, Wo * Cout)

    # Optional bf16 MXU inputs (v5e/v6e perf); f32 accumulation is kept either
    # way and BN/ReLU math stays f32.  Off by default for the 1e-4 self-check.
    lhs_dtype = jnp.bfloat16 if use_bf16_matmul else jnp.float32
    b = b.astype(lhs_dtype)

    # Constant one-hot lane<->channel matrices for the BN channel reduction /
    # broadcast (1/count folded into the reduction side).
    onehot = (np.arange(Wo * Cout)[:, None] % Cout
              == np.arange(Cout)[None, :]).astype(np.float32)           # (Wo*Cout, Cout)
    fold = jnp.asarray(onehot / float(N * Ho * Wo))
    expand = jnp.asarray(onehot.T)

    gamma2 = gamma.reshape(1, Cout).astype(jnp.float32)
    beta2 = beta.reshape(1, Cout).astype(jnp.float32)

    kernel = functools.partial(_conv_bn_relu_kernel, stride=stride,
                               padding=padding, dilation=dilation, eps=eps)

    out_slab = pl.pallas_call(
        kernel,
        out_shape=jax.ShapeDtypeStruct((N * Ho, Wo * Cout), jnp.float32),
        in_specs=[pl.BlockSpec(memory_space=pltpu.MemorySpace.VMEM)] * 6,
        out_specs=pl.BlockSpec(memory_space=pltpu.MemorySpace.VMEM),
        scratch_shapes=[pltpu.VMEM((N, Ho, Cin * KH * W), lhs_dtype)],
        compiler_params=pltpu.CompilerParams(
            vmem_limit_bytes=32 * 1024 * 1024),
    )(x_nchw.astype(jnp.float32), b, fold, expand, gamma2, beta2)

    # Layout plumbing back to NCHW (single cheap XLA fusion outside the kernel).
    return out_slab.reshape(N, Ho, Wo, Cout).transpose(0, 3, 1, 2)


def _reference(x_nchw, weight_oihw, gamma, beta,
               *, stride=1, padding=0, dilation=1, eps=1e-5):
    """Pure-JAX reference for a correctness sanity check."""
    y = jax.lax.conv_general_dilated(
        x_nchw, weight_oihw,
        window_strides=(stride, stride),
        padding=[(padding, padding), (padding, padding)],
        rhs_dilation=(dilation, dilation),
        dimension_numbers=("NCHW", "OIHW", "NCHW"))
    mean = jnp.mean(y, axis=(0, 2, 3), keepdims=True)
    var = jnp.mean((y - mean) ** 2, axis=(0, 2, 3), keepdims=True)
    yb = (y - mean) * jax.lax.rsqrt(var + eps)
    yb = yb * gamma.reshape(1, -1, 1, 1) + beta.reshape(1, -1, 1, 1)
    return jnp.maximum(yb, 0.0)


if __name__ == "__main__":
    # Module config: ConvBnRelu(in_channel=4, out_channel=8, kernel_size=3,
    #                           stride=1, padding=1)
    N, Cin, H, W = 2, 4, 16, 16
    Cout, KH, KW = 8, 3, 3
    stride, padding, dilation = 1, 1, 1

    key = jax.random.PRNGKey(0)
    kx, kw, kg, kb = jax.random.split(key, 4)
    x = jax.random.normal(kx, (N, Cin, H, W), dtype=jnp.float32)
    fan_in = Cin * KH * KW
    weight = jax.random.normal(kw, (Cout, Cin, KH, KW), dtype=jnp.float32)
    weight = weight * jnp.sqrt(2.0 / fan_in)
    # BN affine parameters (non-default values to exercise the affine path;
    # PyTorch defaults are gamma=1, beta=0).
    gamma = 1.0 + 0.1 * jax.random.normal(kg, (Cout,), dtype=jnp.float32)
    beta = 0.1 * jax.random.normal(kb, (Cout,), dtype=jnp.float32)

    fwd = jax.jit(lambda xx, ww, gg, bb: conv_bn_relu(
        xx, ww, gg, bb, stride=stride, padding=padding, dilation=dilation))
    out = jax.block_until_ready(fwd(x, weight, gamma, beta))

    ref = _reference(x, weight, gamma, beta,
                     stride=stride, padding=padding, dilation=dilation)
    assert out.shape == (N, Cout, H, W), out.shape
    assert jnp.allclose(out, ref, atol=1e-4, rtol=1e-4), (
        "max abs diff vs reference: "
        + str(float(jnp.max(jnp.abs(out - ref)))))

    print("KERNEL_OK")
</pallas_src>

<mosaic_0001>
module attributes {stable_mosaic.version = 11 : i64} {
  func.func @_conv_bn_relu_kernel(%arg0: memref<2x4x16x16xf32, #tpu.memory_space<vmem>>, %arg1: memref<192x128xf32, #tpu.memory_space<vmem>>, %arg2: memref<128x8xf32, #tpu.memory_space<vmem>>, %arg3: memref<8x128xf32, #tpu.memory_space<vmem>>, %arg4: memref<1x8xf32, #tpu.memory_space<vmem>>, %arg5: memref<1x8xf32, #tpu.memory_space<vmem>>, %arg6: memref<32x128xf32, #tpu.memory_space<vmem>>, %arg7: memref<2x16x192xf32, #tpu.memory_space<vmem>>) attributes {dimension_semantics = [], scalar_prefetch = 0 : i64, scratch_operands = 1 : i64, tpu.core_type = #tpu.core_type<tc>} {
    %cst = arith.constant 0.000000e+00 : f32
    %0 = vector.broadcast %cst : f32 to vector<2x16x192xf32>
    %c0 = arith.constant 0 : index
    %c0_0 = arith.constant 0 : index
    %c0_1 = arith.constant 0 : index
    %1 = vector.load %arg7[%c0, %c0_0, %c0_1] : memref<2x16x192xf32, #tpu.memory_space<vmem>>, vector<2x16x192xf32>
    tpu.vector_store %arg7[%c0, %c0_0, %c0_1], %0 {strides = array<i32>} : memref<2x16x192xf32, #tpu.memory_space<vmem>>, vector<2x16x192xf32>,
    %c0_2 = arith.constant 0 : index
    %c0_3 = arith.constant 0 : index
    %c0_4 = arith.constant 0 : index
    %c0_5 = arith.constant 0 : index
    %2 = vector.load %arg0[%c0_2, %c0_3, %c0_4, %c0_5] : memref<2x4x16x16xf32, #tpu.memory_space<vmem>>, vector<2x4x16x16xf32>
    %3 = vector.extract_strided_slice %2 {offsets = [0, 0, 0, 0], sizes = [2, 1, 15, 16], strides = [1, 1, 1, 1]} : vector<2x4x16x16xf32> to vector<2x1x15x16xf32>
    %4 = vector.shape_cast %3 : vector<2x1x15x16xf32> to vector<2x15x16xf32>
    %c0_6 = arith.constant 0 : index
    %c1 = arith.constant 1 : index
    %c0_7 = arith.constant 0 : index
    %5 = vector.load %arg7[%c0_6, %c1, %c0_7] : memref<2x16x192xf32, #tpu.memory_space<vmem>>, vector<2x15x16xf32>
    tpu.vector_store %arg7[%c0_6, %c1, %c0_7], %4 {strides = array<i32>} : memref<2x16x192xf32, #tpu.memory_space<vmem>>, vector<2x15x16xf32>,
    %6 = vector.extract_strided_slice %2 {offsets = [0, 0, 0, 0], sizes = [2, 1, 16, 16], strides = [1, 1, 1, 1]} : vector<2x4x16x16xf32> to vector<2x1x16x16xf32>
    %7 = vector.shape_cast %6 : vector<2x1x16x16xf32> to vector<2x16x16xf32>
    %c0_8 = arith.constant 0 : index
    %c0_9 = arith.constant 0 : index
    %c16 = arith.constant 16 : index
    %8 = vector.load %arg7[%c0_8, %c0_9, %c16] : memref<2x16x192xf32, #tpu.memory_space<vmem>>, vector<2x16x16xf32>
    tpu.vector_store %arg7[%c0_8, %c0_9, %c16], %7 {strides = array<i32>} : memref<2x16x192xf32, #tpu.memory_space<vmem>>, vector<2x16x16xf32>,
    %9 = vector.extract_strided_slice %2 {offsets = [0, 0, 1, 0], sizes = [2, 1, 15, 16], strides = [1, 1, 1, 1]} : vector<2x4x16x16xf32> to vector<2x1x15x16xf32>
    %10 = vector.shape_cast %9 : vector<2x1x15x16xf32> to vector<2x15x16xf32>
    %c0_10 = arith.constant 0 : index
    %c0_11 = arith.constant 0 : index
    %c32 = arith.constant 32 : index
    %11 = vector.load %arg7[%c0_10, %c0_11, %c32] : memref<2x16x192xf32, #tpu.memory_space<vmem>>, vector<2x15x16xf32>
    tpu.vector_store %arg7[%c0_10, %c0_11, %c32], %10 {strides = array<i32>} : memref<2x16x192xf32, #tpu.memory_space<vmem>>, vector<2x15x16xf32>,
    %12 = vector.extract_strided_slice %2 {offsets = [0, 1, 0, 0], sizes = [2, 1, 15, 16], strides = [1, 1, 1, 1]} : vector<2x4x16x16xf32> to vector<2x1x15x16xf32>
    %13 = vector.shape_cast %12 : vector<2x1x15x16xf32> to vector<2x15x16xf32>
    %c0_12 = arith.constant 0 : index
    %c1_13 = arith.constant 1 : index
    %c48 = arith.constant 48 : index
    %14 = vector.load %arg7[%c0_12, %c1_13, %c48] : memref<2x16x192xf32, #tpu.memory_space<vmem>>, vector<2x15x16xf32>
    tpu.vector_store %arg7[%c0_12, %c1_13, %c48], %13 {strides = array<i32>} : memref<2x16x192xf32, #tpu.memory_space<vmem>>, vector<2x15x16xf32>,
    %15 = vector.extract_strided_slice %2 {offsets = [0, 1, 0, 0], sizes = [2, 1, 16, 16], strides = [1, 1, 1, 1]} : vector<2x4x16x16xf32> to vector<2x1x16x16xf32>
    %16 = vector.shape_cast %15 : vector<2x1x16x16xf32> to vector<2x16x16xf32>
    %c0_14 = arith.constant 0 : index
    %c0_15 = arith.constant 0 : index
    %c64 = arith.constant 64 : index
    %17 = vector.load %arg7[%c0_14, %c0_15, %c64] : memref<2x16x192xf32, #tpu.memory_space<vmem>>, vector<2x16x16xf32>
    tpu.vector_store %arg7[%c0_14, %c0_15, %c64], %16 {strides = array<i32>} : memref<2x16x192xf32, #tpu.memory_space<vmem>>, vector<2x16x16xf32>,
    %18 = vector.extract_strided_slice %2 {offsets = [0, 1, 1, 0], sizes = [2, 1, 15, 16], strides = [1, 1, 1, 1]} : vector<2x4x16x16xf32> to vector<2x1x15x16xf32>
    %19 = vector.shape_cast %18 : vector<2x1x15x16xf32> to vector<2x15x16xf32>
    %c0_16 = arith.constant 0 : index
    %c0_17 = arith.constant 0 : index
    %c80 = arith.constant 80 : index
    %20 = vector.load %arg7[%c0_16, %c0_17, %c80] : memref<2x16x192xf32, #tpu.memory_space<vmem>>, vector<2x15x16xf32>
    tpu.vector_store %arg7[%c0_16, %c0_17, %c80], %19 {strides = array<i32>} : memref<2x16x192xf32, #tpu.memory_space<vmem>>, vector<2x15x16xf32>,
    %21 = vector.extract_strided_slice %2 {offsets = [0, 2, 0, 0], sizes = [2, 1, 15, 16], strides = [1, 1, 1, 1]} : vector<2x4x16x16xf32> to vector<2x1x15x16xf32>
    %22 = vector.shape_cast %21 : vector<2x1x15x16xf32> to vector<2x15x16xf32>
    %c0_18 = arith.constant 0 : index
    %c1_19 = arith.constant 1 : index
    %c96 = arith.constant 96 : index
    %23 = vector.load %arg7[%c0_18, %c1_19, %c96] : memref<2x16x192xf32, #tpu.memory_space<vmem>>, vector<2x15x16xf32>
    tpu.vector_store %arg7[%c0_18, %c1_19, %c96], %22 {strides = array<i32>} : memref<2x16x192xf32, #tpu.memory_space<vmem>>, vector<2x15x16xf32>,
    %24 = vector.extract_strided_slice %2 {offsets = [0, 2, 0, 0], sizes = [2, 1, 16, 16], strides = [1, 1, 1, 1]} : vector<2x4x16x16xf32> to vector<2x1x16x16xf32>
    %25 = vector.shape_cast %24 : vector<2x1x16x16xf32> to vector<2x16x16xf32>
    %c0_20 = arith.constant 0 : index
    %c0_21 = arith.constant 0 : index
    %c112 = arith.constant 112 : index
    %26 = vector.load %arg7[%c0_20, %c0_21, %c112] : memref<2x16x192xf32, #tpu.memory_space<vmem>>, vector<2x16x16xf32>
    tpu.vector_store %arg7[%c0_20, %c0_21, %c112], %25 {strides = array<i32>} : memref<2x16x192xf32, #tpu.memory_space<vmem>>, vector<2x16x16xf32>,
    %27 = vector.extract_strided_slice %2 {offsets = [0, 2, 1, 0], sizes = [2, 1, 15, 16], strides = [1, 1, 1, 1]} : vector<2x4x16x16xf32> to vector<2x1x15x16xf32>
    %28 = vector.shape_cast %27 : vector<2x1x15x16xf32> to vector<2x15x16xf32>
    %c0_22 = arith.constant 0 : index
    %c0_23 = arith.constant 0 : index
    %c128 = arith.constant 128 : index
    %29 = vector.load %arg7[%c0_22, %c0_23, %c128] : memref<2x16x192xf32, #tpu.memory_space<vmem>>, vector<2x15x16xf32>
    tpu.vector_store %arg7[%c0_22, %c0_23, %c128], %28 {strides = array<i32>} : memref<2x16x192xf32, #tpu.memory_space<vmem>>, vector<2x15x16xf32>,
    %30 = vector.extract_strided_slice %2 {offsets = [0, 3, 0, 0], sizes = [2, 1, 15, 16], strides = [1, 1, 1, 1]} : vector<2x4x16x16xf32> to vector<2x1x15x16xf32>
    %31 = vector.shape_cast %30 : vector<2x1x15x16xf32> to vector<2x15x16xf32>
    %c0_24 = arith.constant 0 : index
    %c1_25 = arith.constant 1 : index
    %c144 = arith.constant 144 : index
    %32 = vector.load %arg7[%c0_24, %c1_25, %c144] : memref<2x16x192xf32, #tpu.memory_space<vmem>>, vector<2x15x16xf32>
    tpu.vector_store %arg7[%c0_24, %c1_25, %c144], %31 {strides = array<i32>} : memref<2x16x192xf32, #tpu.memory_space<vmem>>, vector<2x15x16xf32>,
    %33 = vector.extract_strided_slice %2 {offsets = [0, 3, 0, 0], sizes = [2, 1, 16, 16], strides = [1, 1, 1, 1]} : vector<2x4x16x16xf32> to vector<2x1x16x16xf32>
    %34 = vector.shape_cast %33 : vector<2x1x16x16xf32> to vector<2x16x16xf32>
    %c0_26 = arith.constant 0 : index
    %c0_27 = arith.constant 0 : index
    %c160 = arith.constant 160 : index
    %35 = vector.load %arg7[%c0_26, %c0_27, %c160] : memref<2x16x192xf32, #tpu.memory_space<vmem>>, vector<2x16x16xf32>
    tpu.vector_store %arg7[%c0_26, %c0_27, %c160], %34 {strides = array<i32>} : memref<2x16x192xf32, #tpu.memory_space<vmem>>, vector<2x16x16xf32>,
    %36 = vector.extract_strided_slice %2 {offsets = [0, 3, 1, 0], sizes = [2, 1, 15, 16], strides = [1, 1, 1, 1]} : vector<2x4x16x16xf32> to vector<2x1x15x16xf32>
    %37 = vector.shape_cast %36 : vector<2x1x15x16xf32> to vector<2x15x16xf32>
    %c0_28 = arith.constant 0 : index
    %c0_29 = arith.constant 0 : index
    %c176 = arith.constant 176 : index
    %38 = vector.load %arg7[%c0_28, %c0_29, %c176] : memref<2x16x192xf32, #tpu.memory_space<vmem>>, vector<2x15x16xf32>
    tpu.vector_store %arg7[%c0_28, %c0_29, %c176], %37 {strides = array<i32>} : memref<2x16x192xf32, #tpu.memory_space<vmem>>, vector<2x15x16xf32>,
    %c0_30 = arith.constant 0 : index
    %c0_31 = arith.constant 0 : index
    %c0_32 = arith.constant 0 : index
    %39 = vector.load %arg7[%c0_30, %c0_31, %c0_32] : memref<2x16x192xf32, #tpu.memory_space<vmem>>, vector<2x16x192xf32>
    %40 = vector.shape_cast %39 : vector<2x16x192xf32> to vector<32x192xf32>
    %c0_33 = arith.constant 0 : index
    %c0_34 = arith.constant 0 : index
    %41 = vector.load %arg1[%c0_33, %c0_34] : memref<192x128xf32, #tpu.memory_space<vmem>>, vector<192x128xf32>
    %cst_35 = arith.constant dense<0.000000e+00> : vector<32x128xf32>
    %42 = tpu.matmul %40, %41, %cst_35 {dimension_numbers = #tpu.dot_dimension_numbers<[1], [0], [0], [1], [0, 0, 1, 1], [], []>} : vector<32x192xf32>, vector<192x128xf32>, vector<32x128xf32> -> vector<32x128xf32>
    %cst_36 = arith.constant dense<0.000000e+00> : vector<128xf32>
    %43 = vector.multi_reduction <add>, %42, %cst_36 [0] : vector<32x128xf32> to vector<128xf32>
    %44 = vector.shape_cast %43 : vector<128xf32> to vector<1x128xf32>
    %45 = arith.mulf %42, %42 : vector<32x128xf32>
    %cst_37 = arith.constant dense<0.000000e+00> : vector<128xf32>
    %46 = vector.multi_reduction <add>, %45, %cst_37 [0] : vector<32x128xf32> to vector<128xf32>
    %47 = vector.shape_cast %46 : vector<128xf32> to vector<1x128xf32>
    %c0_38 = arith.constant 0 : index
    %c0_39 = arith.constant 0 : index
    %48 = vector.load %arg2[%c0_38, %c0_39] : memref<128x8xf32, #tpu.memory_space<vmem>>, vector<128x8xf32>
    %cst_40 = arith.constant dense<0.000000e+00> : vector<1x8xf32>
    %49 = tpu.matmul %44, %48, %cst_40 {dimension_numbers = #tpu.dot_dimension_numbers<[1], [0], [0], [1], [0, 0, 1, 1], [], []>} : vector<1x128xf32>, vector<128x8xf32>, vector<1x8xf32> -> vector<1x8xf32>
    %c0_41 = arith.constant 0 : index
    %c0_42 = arith.constant 0 : index
    %50 = vector.load %arg2[%c0_41, %c0_42] : memref<128x8xf32, #tpu.memory_space<vmem>>, vector<128x8xf32>
    %cst_43 = arith.constant dense<0.000000e+00> : vector<1x8xf32>
    %51 = tpu.matmul %47, %50, %cst_43 {dimension_numbers = #tpu.dot_dimension_numbers<[1], [0], [0], [1], [0, 0, 1, 1], [], []>} : vector<1x128xf32>, vector<128x8xf32>, vector<1x8xf32> -> vector<1x8xf32>
    %52 = arith.mulf %49, %49 : vector<1x8xf32>
    %53 = arith.subf %51, %52 : vector<1x8xf32>
    %cst_44 = arith.constant 0.000000e+00 : f32
    %54 = vector.broadcast %cst_44 : f32 to vector<1x8xf32>
    %55 = arith.maximumf %53, %54 : vector<1x8xf32>
    %c0_45 = arith.constant 0 : index
    %c0_46 = arith.constant 0 : index
    %56 = vector.load %arg4[%c0_45, %c0_46] : memref<1x8xf32, #tpu.memory_space<vmem>>, vector<1x8xf32>
    %cst_47 = arith.constant 9.99999974E-6 : f32
    %57 = vector.broadcast %cst_47 : f32 to vector<1x8xf32>
    %58 = arith.addf %55, %57 : vector<1x8xf32>
    %59 = math.rsqrt %58 : vector<1x8xf32>
    %60 = arith.mulf %56, %59 : vector<1x8xf32>
    %c0_48 = arith.constant 0 : index
    %c0_49 = arith.constant 0 : index
    %61 = vector.load %arg5[%c0_48, %c0_49] : memref<1x8xf32, #tpu.memory_space<vmem>>, vector<1x8xf32>
    %62 = arith.mulf %49, %60 : vector<1x8xf32>
    %63 = arith.subf %61, %62 : vector<1x8xf32>
    %c0_50 = arith.constant 0 : index
    %c0_51 = arith.constant 0 : index
    %64 = vector.load %arg3[%c0_50, %c0_51] : memref<8x128xf32, #tpu.memory_space<vmem>>, vector<8x128xf32>
    %cst_52 = arith.constant dense<0.000000e+00> : vector<1x128xf32>
    %65 = tpu.matmul %60, %64, %cst_52 {dimension_numbers = #tpu.dot_dimension_numbers<[1], [0], [0], [1], [0, 0, 1, 1], [], []>} : vector<1x8xf32>, vector<8x128xf32>, vector<1x128xf32> -> vector<1x128xf32>
    %c0_53 = arith.constant 0 : index
    %c0_54 = arith.constant 0 : index
    %66 = vector.load %arg3[%c0_53, %c0_54] : memref<8x128xf32, #tpu.memory_space<vmem>>, vector<8x128xf32>
    %cst_55 = arith.constant dense<0.000000e+00> : vector<1x128xf32>
    %67 = tpu.matmul %63, %66, %cst_55 {dimension_numbers = #tpu.dot_dimension_numbers<[1], [0], [0], [1], [0, 0, 1, 1], [], []>} : vector<1x8xf32>, vector<8x128xf32>, vector<1x128xf32> -> vector<1x128xf32>
    %68 = vector.broadcast %65 : vector<1x128xf32> to vector<32x128xf32>
    %69 = arith.mulf %42, %68 : vector<32x128xf32>
    %70 = vector.broadcast %67 : vector<1x128xf32> to vector<32x128xf32>
    %71 = arith.addf %69, %70 : vector<32x128xf32>
    %cst_56 = arith.constant 0.000000e+00 : f32
    %72 = vector.broadcast %cst_56 : f32 to vector<32x128xf32>
    %73 = arith.maximumf %71, %72 : vector<32x128xf32>
    %c0_57 = arith.constant 0 : index
    %c0_58 = arith.constant 0 : index
    %74 = vector.load %arg6[%c0_57, %c0_58] : memref<32x128xf32, #tpu.memory_space<vmem>>, vector<32x128xf32>
    tpu.vector_store %arg6[%c0_57, %c0_58], %73 {strides = array<i32>} : memref<32x128xf32, #tpu.memory_space<vmem>>, vector<32x128xf32>,
    return
  }
}

</mosaic_0001>

<bundles_post_ra>
// kernel: _lambda_.1
= control target key start
LH: loop header
LB: loop body
LE: loop exit
PB: predicated region body
PF: predicated region fallthrough
CT: control target
= control target key end

     0   :  { %s591_s27 = smov 16   ;;  %s592_s30 = smov 48   ;;  %vm86_vm0 = vcmask 1046528   ;;  %vm52_vm1 = vcmask 1040384   ;;  %vm63_vm2 = vcmask 130049   ;;  %v598_v45 = vmov 0.0   ;;  %s1009_s0 = inlined_call_operand.vmem [shape: f32[2,4,16,16], index: 0, kind: input, shape index: {}]   ;;  %s1010_s1 = inlined_call_operand.vmem [shape: f32[192,128], index: 1, kind: input, shape index: {}]   ;;  %s1011_s2 = inlined_call_operand.vmem [shape: f32[128,8], index: 2, kind: input, shape index: {}]   ;;  %s1012_s3 = inlined_call_operand.vmem [shape: f32[8,128], index: 3, kind: input, shape index: {}]   ;;  %s1013_s4 = inlined_call_operand.vmem [shape: f32[1,8], index: 4, kind: input, shape index: {}]   ;;  %s1014_s5 = inlined_call_operand.vmem [shape: f32[1,8], index: 5, kind: input, shape index: {}]   ;;  %s1015_s6 = inlined_call_operand.vmem [shape: f32[32,128], index: 6, kind: output, shape index: {}]  }
   0x1   :  { %v637_v0 = vld [vmem:[%s1009_s0] sm:$0xff]  ;;  %v34_v1 = vld [vmem:[%s1009_s0 + $0x10] sm:$0xff]  ;;  %v645_v2 = vld [vmem:[%s1009_s0 + $0x8] sm:$0xff]  ;;  %s593_s7 = smov 80   ;;  %s594_s8 = smov 32   ;;  %23 = vst [vmem:[#allocation2] sm:$0xff] %v598_v45 }
   0x2   :  { %69 = vrot.lane.b32.xlu0 %v637_v0, %s591_s27  ;;  %v115_v3 = vrot.slane %v34_v1, 7  ;;  %v87_v4 = vrot.slane %v637_v0, 1  ;;  %v88_v5 = vrot.slane %v645_v2, 1  ;;  %v35_v6 = vld [vmem:[%s1009_s0 + $0x18] sm:$0xff]  ;;  %v156_v7 = vrot.slane %v34_v1, 1  ;;  %v38_v11 = vld [vmem:[%s1009_s0 + $0x30] sm:$0xff] }
   0x3   :  { %v157_v8 = vrot.slane %v35_v6, 1  ;;  %v665_v12 = vld [vmem:[%s1009_s0 + $0x20] sm:$0xff]  ;;  %v244_v13 = vrot.slane %v38_v11, 7  ;;  %s595_s13 = smov 64   ;;  %v39_v15 = vld [vmem:[%s1009_s0 + $0x38] sm:$0xff]  ;;  %s596_s16 = smov 96  }
   0x4   :  { %121 = vrot.lane.b32.xlu1 %v115_v3, %s592_s30  ;;  %v89_v10 = vsel %vm86_vm0, %v87_v4, %v88_v5  ;;  %v184_v14 = vrot.slane %v665_v12, 7  ;;  %v283_v16 = vrot.slane %v38_v11, 1  ;;  %v284_v17 = vrot.slane %v39_v15, 1  ;;  %s597_s17 = smov 112   ;;  %v687_v21 = vld [vmem:[%s1009_s0 + $0x28] sm:$0xff]  ;;  %v700_v26 = vld [vmem:[%s1009_s0 + $0x40] sm:$0xff] }
   0x5   :  { %v158_v9 = vsel %vm86_vm0, %v156_v7, %v157_v8  ;;  %v116_v19 = vrot.slane %v35_v6, 7  ;;  %v245_v22 = vrot.slane %v39_v15, 7  ;;  %v185_v23 = vrot.slane %v687_v21, 7  ;;  %v705_v27 = vld [vmem:[%s1009_s0 + $0x48] sm:$0xff]  ;;  %v42_v30 = vld [vmem:[%s1009_s0 + $0x50] sm:$0xff]  ;;  %v43_v33 = vld [vmem:[%s1009_s0 + $0x58] sm:$0xff] }
   0x6   :  { %162 = vrot.lane.b32.xlu2 %v158_v9, %s593_s7  ;;  %v285_v18 = vsel %vm86_vm0, %v283_v16, %v284_v17  ;;  %v90_v28 = vrot.slane %v700_v26, 1  ;;  %v91_v29 = vrot.slane %v705_v27, 1  ;;  %v118_v32 = vrot.slane %v42_v30, 7  ;;  %v46_v36 = vld [vmem:[%s1009_s0 + $0x70] sm:$0xff]  ;;  %v732_v39 = vld [vmem:[%s1009_s0 + $0x60] sm:$0xff]  ;;  %v739_v41 = vld [vmem:[%s1009_s0 + $0x78] sm:$0xff] }
   0x7   :  { %v117_v20 = vsel %vm52_vm1, %v115_v3, %v116_v19  ;;  %v246_v24 = vsel %vm52_vm1, %v244_v13, %v245_v22  ;;  %v186_v25 = vsel %vm52_vm1, %v184_v14, %v185_v23  ;;  %v159_v34 = vrot.slane %v42_v30, 1  ;;  %26 = vst [vmem:[#allocation2 + $0x10] sm:$0xff] %v598_v45  ;;  %v329_v50 = vld [vmem:[%s1010_s1 + $0x78] sm:$0xff]  ;;  %v328_v51 = vld [vmem:[%s1010_s1 + $0x70] sm:$0xff]  ;;  %v327_v52 = vld [vmem:[%s1010_s1 + $0x68] sm:$0xff] }
   0x8   :  { %v92_v31 = vsel %vm86_vm0, %v90_v28, %v91_v29  ;;  %v160_v35 = vrot.slane %v43_v33, 1  ;;  %v247_v38 = vrot.slane %v46_v36, 7  ;;  %v187_v40 = vrot.slane %v732_v39, 7  ;;  %28 = vst [vmem:[#allocation2 + $0x20] sm:$0xff] %v598_v45  ;;  %350 = vmatpush.msra.mxu0 %v329_v50  ;;  %v773_v53 = vld [vmem:[%s1009_s0 + $0x68] sm:$0xff]  ;;  %v326_v55 = vld [vmem:[%s1010_s1 + $0x60] sm:$0xff] }
   0x9   :  { %v53_v42 = vrot.slane %v637_v0, 7  ;;  %v286_v43 = vrot.slane %v46_v36, 1  ;;  %v287_v44 = vrot.slane %v739_v41, 1  ;;  %v56_v46 = vrot.slane %v700_v26, 7  ;;  %30 = vst [vmem:[#allocation2 + $0x30] sm:$0xff] %v598_v45  ;;  %v325_v59 = vld [vmem:[%s1010_s1 + $0x58] sm:$0xff] }
   0xa   :  { %93 = vrot.lane.b32.xlu0 %v89_v10, %s594_s8  ;;  %v161_v37 = vsel %vm86_vm0, %v159_v34, %v160_v35  ;;  %v119_v48 = vrot.slane %v43_v33, 7  ;;  %351 = vmatpush.msra.mxu0 %v328_v51  ;;  %v248_v54 = vrot.slane %v739_v41, 7  ;;  %v188_v56 = vrot.slane %v773_v53, 7  ;;  %v324_v62 = vld [vmem:[%s1010_s1 + $0x50] sm:$0xff]  ;;  %v323_v63 = vld [vmem:[%s1010_s1 + $0x48] sm:$0xff]  ;;  %v322_v4 = vld [vmem:[%s1010_s1 + $0x40] sm:$0xff] }
   0xb   :  { %v288_v47 = vsel %vm86_vm0, %v286_v43, %v287_v44  ;;  %64 = vst.msk [vmem:[#allocation2] sm:$0xfe] %vm63_vm2, %v53_v42  ;;  %v225_v57 = vrot.slane %v665_v12, 1  ;;  %vm24_vm3 = vcmask 523264   ;;  %vm65_vm4 = vcmask 130048   ;;  %v320_v7 = vld [vmem:[%s1010_s1 + $0x30] sm:$0xff] }
   0xc   :  { %139 = vrot.lane.b32.xlu1 %v34_v1, %s595_s13  ;;  %67 = vst.msk [vmem:[#allocation2 + $0x20] sm:$0xfe] %vm63_vm2, %v56_v46  ;;  %v120_v49 = vsel %vm52_vm1, %v118_v32, %v119_v48  ;;  %352 = vmatpush.msra.mxu0 %v327_v52  ;;  %v249_v58 = vsel %vm52_vm1, %v247_v38, %v248_v54  ;;  %v226_v60 = vrot.slane %v687_v21, 1  ;;  %vm262_vm5 = vcmask 261249   ;;  %v319_v9 = vld [vmem:[%s1010_s1 + $0x28] sm:$0xff]  ;;  %v314_v23 = vld [vmem:[%s1010_s1] sm:$0xff] }
   0xd   :  { %v189_v61 = vsel %vm52_vm1, %v187_v40, %v188_v56  ;;  %25 = vst.msk [vmem:[#allocation2 + $0x8] sm:$0xff] %vm24_vm3, %v598_v45  ;;  %v335_v10 = vld [vmem:[%s1010_s1 + $0xa8] sm:$0xff]  ;;  %v54_v16 = vrot.slane %v645_v2, 7  ;;  %vm81_vm6 = vcmask 261248   ;;  %v330_v0 = vld [vmem:[%s1010_s1 + $0x80] sm:$0xff]  ;;  %vm236_vm7 = vcmask 129024  }
   0xe   :  { %250 = vrot.lane.b32.xlu2 %v244_v13, %s591_s27  ;;  %353 = vmatpush.msra.mxu0 %v326_v55  ;;  %v227_v1 = vsel %vm86_vm0, %v225_v57, %v226_v60  ;;  %27 = vst.msk [vmem:[#allocation2 + $0x18] sm:$0xff] %vm24_vm3, %v598_v45  ;;  %v334_v13 = vld [vmem:[%s1010_s1 + $0xa0] sm:$0xff]  ;;  %vm105_vm8 = vcmask 392448   ;;  %vm133_vm9 = vcmask 523649   ;;  %vm151_vm10 = vcmask 654848  }
   0xf   :  { %235 = vst.msk [vmem:[#allocation2 + $0x8] sm:$0xff] %vm65_vm4, %v227_v1  ;;  %v55_v19 = vsel %vm52_vm1, %v53_v42, %v54_v16  ;;  %vm174_vm11 = vcmask 786048   ;;  %vm202_vm12 = vcmask 917249   ;;  %vm220_vm13 = vcmask 1048448   ;;  %v440_v16 = vld [vmem:[%s1011_s2 + $0x50] sm:$0xff] }
  0x10   :  { %354 = vmatpush.msra.mxu0 %v325_v59  ;;  %29 = vst.msk [vmem:[#allocation2 + $0x28] sm:$0xff] %vm24_vm3, %v598_v45  ;;  %vm135_vm14 = vcmask 523648   ;;  %vm1016_vm15 = vcmask 391424   ;;  %vm176_vm2 = vcmask 785024   ;;  %v229_v42 = vrot.slane %v773_v53, 1 }
  0x11   :  { %31 = vst.msk [vmem:[#allocation2 + $0x38] sm:$0xff] %vm24_vm3, %v598_v45  ;;  %v57_v48 = vrot.slane %v705_v27, 7 }
  0x12   :  { %190 = vrot.lane.b32.xlu0 %v184_v14, %s596_s16  ;;  %355 = vmatpush.msra.mxu0 %v324_v62  ;;  %v317_v14 = vld [vmem:[%s1010_s1 + $0x18] sm:$0xff]  ;;  %66 = vst.msk [vmem:[#allocation2 + $0x10] sm:$0xff] %vm65_vm4, %v55_v19 }
  0x13   :  { %237 = vst.msk [vmem:[#allocation2 + $0x18] sm:$0x7f] %vm236_vm7, %v226_v60  ;;  %v58_v50 = vsel %vm52_vm1, %v56_v46, %v57_v48  ;;  %vm1017_vm1 = vcmask 391424   ;;  %v437_v19 = vld [vmem:[%s1011_s2 + $0x38] sm:$0xff] }
  0x14   :  { %267 = vrot.lane.b32.xlu1 %v38_v11, %s594_s8  ;;  %356 = vmatpush.msra.mxu0 %v323_v63  ;;  %239 = vst.msk [vmem:[#allocation2 + $0x38] sm:$0x7f] %vm236_vm7, %v229_v42 }
  0x15   :  { %68 = vst.msk [vmem:[#allocation2 + $0x30] sm:$0xff] %vm65_vm4, %v58_v50 }
  0x16   :  { %208 = vrot.lane.b32.xlu2 %v665_v12, %s597_s17  ;;  %357 = vmatpush.msra.mxu0 %v322_v4  ;;  %v318_v12 = vld [vmem:[%s1010_s1 + $0x20] sm:$0xff] }
  0x1a   :  { %289 = vrot.lane.b32.xlu0 %v285_v18, %s592_s30  ;;  %v332_v18 = vld [vmem:[%s1010_s1 + $0x90] sm:$0xff] }
  0x1c   :  { %71 = vrot.lane.b32.xlu1 %v645_v2, %s591_s27  ;;  %v331_v2 = vld [vmem:[%s1010_s1 + $0x88] sm:$0xff] }
  0x1e   :  { %95 = vrot.lane.b32.xlu2 %v88_v5, %s594_s8  ;;  %v321_v5 = vld [vmem:[%s1010_s1 + $0x38] sm:$0xff] }
  0x1f   :  { %358 = vmatpush.msra.mxu0 %v321_v5 }
  0x21   :  { %359 = vmatpush.msra.mxu0 %v320_v7 }
  0x22   :  { %123 = vrot.lane.b32.xlu0 %v117_v20, %s592_s30  ;;  %v315_v20 = vld [vmem:[%s1010_s1 + $0x8] sm:$0xff] }
  0x23   :  { %360 = vmatpush.msra.mxu0 %v319_v9 }
  0x24   :  { %141 = vrot.lane.b32.xlu1 %v35_v6, %s595_s13  ;;  %v337_v6 = vld [vmem:[%s1010_s1 + $0xb8] sm:$0xff] }
  0x25   :  { %387 = vmatpush.msra.mxu1 %v337_v6  ;;  %361 = vmatpush.msra.mxu0 %v318_v12  ;;  %v444_v12 = vld [vmem:[%s1011_s2 + $0x70] sm:$0xff] }
  0x26   :  { %164 = vrot.lane.b32.xlu2 %v157_v8, %s593_s7  ;;  %v336_v8 = vld [vmem:[%s1010_s1 + $0xb0] sm:$0xff] }
  0x27   :  { %388 = vmatpush.msra.mxu1 %v336_v8  ;;  %362 = vmatpush.msra.mxu0 %v317_v14  ;;  %v442_v14 = vld [vmem:[%s1011_s2 + $0x60] sm:$0xff] }
  0x29   :  { %389 = vmatpush.msra.mxu1 %v335_v10 }
  0x2a   :  { %252 = vrot.lane.b32.xlu0 %v246_v24, %s591_s27 }
  0x2b   :  { %390 = vmatpush.msra.mxu1 %v334_v13  ;;  %v443_v13 = vld [vmem:[%s1011_s2 + $0x68] sm:$0xff] }
  0x2c   :  { %192 = vrot.lane.b32.xlu1 %v186_v25, %s596_s16 }
  0x2e   :  { %269 = vrot.lane.b32.xlu2 %v39_v15, %s594_s8  ;;  %v333_v15 = vld [vmem:[%s1010_s1 + $0x98] sm:$0xff] }
  0x2f   :  { %391 = vmatpush.msra.mxu1 %v333_v15  ;;  %v441_v15 = vld [vmem:[%s1011_s2 + $0x58] sm:$0xff] }
  0x31   :  { %392 = vmatpush.msra.mxu1 %v332_v18  ;;  %v438_v18 = vld [vmem:[%s1011_s2 + $0x40] sm:$0xff] }
  0x32   :  { %210 = vrot.lane.b32.xlu0 %v687_v21, %s597_s17 }
  0x33   :  { %393 = vmatpush.msra.mxu1 %v331_v2  ;;  %v435_v2 = vld [vmem:[%s1011_s2 + $0x28] sm:$0xff] }
  0x34   :  { %291 = vrot.lane.b32.xlu1 %v284_v17, %s592_s30  ;;  %v316_v17 = vld [vmem:[%s1010_s1 + $0x10] sm:$0xff] }
  0x35   :  { %363 = vmatpush.msra.mxu0 %v316_v17  ;;  %394 = vmatpush.msra.mxu1 %v330_v0  ;;  %v439_v17 = vld [vmem:[%s1011_s2 + $0x48] sm:$0xff]  ;;  %v433_v0 = vld [vmem:[%s1011_s2 + $0x18] sm:$0xff] }
  0x36   :  { %73 = vrot.lane.b32.xlu2 %v700_v26, %s591_s27 }
  0x37   :  { %364 = vmatpush.msra.mxu0 %v315_v20  ;;  %v436_v20 = vld [vmem:[%s1011_s2 + $0x30] sm:$0xff] }
  0x39   :  { %365 = vmatpush.msra.mxu0 %v314_v23 }
  0x3a   :  { %97 = vrot.lane.b32.xlu0 %v92_v31, %s594_s8 }
  0x3c   :  { %125 = vrot.lane.b32.xlu1 %v118_v32, %s592_s30 }
  0x3e   :  { %143 = vrot.lane.b32.xlu2 %v42_v30, %s595_s13 }
  0x42   :  { %166 = vrot.lane.b32.xlu0 %v161_v37, %s593_s7 }
  0x44   :  { %254 = vrot.lane.b32.xlu1 %v247_v38, %s591_s27  ;;  %v228_v38 = vrot.slane %v732_v39, 1 }
  0x46   :  { %194 = vrot.lane.b32.xlu2 %v187_v40, %s596_s16 }
  0x4a   :  { %271 = vrot.lane.b32.xlu0 %v46_v36, %s594_s8 }
  0x4c   :  { %212 = vrot.lane.b32.xlu1 %v732_v39, %s597_s17 }
  0x4e   :  { %293 = vrot.lane.b32.xlu2 %v288_v47, %s592_s30 }
  0x52   :  { %75 = vrot.lane.b32.xlu0 %v705_v27, %s591_s27 }
  0x54   :  { %99 = vrot.lane.b32.xlu1 %v91_v29, %s594_s8 }
  0x56   :  { %127 = vrot.lane.b32.xlu2 %v120_v49, %s592_s30 }
  0x5a   :  { %145 = vrot.lane.b32.xlu0 %v43_v33, %s595_s13 }
  0x5c   :  { %168 = vrot.lane.b32.xlu1 %v160_v35, %s593_s7 }
  0x5e   :  { %256 = vrot.lane.b32.xlu2 %v249_v58, %s591_s27 }
  0x60   :  { %v801_v3 = vpop.permute.xlu2 %162 }
  0x62   :  { %196 = vrot.lane.b32.xlu0 %v189_v61, %s596_s16 }
  0x64   :  { %273 = vrot.lane.b32.xlu1 %v739_v41, %s594_s8 }
  0x66   :  { %214 = vrot.lane.b32.xlu2 %v773_v53, %s597_s17 }
  0x68   :  { %v251_v11 = vpop.permute.xlu2 %250 }
  0x69   :  { %263 = vst.msk [vmem:[#allocation2 + $0x8] sm:$0xfe] %vm262_vm5, %v251_v11  ;;  %v445_v11 = vld [vmem:[%s1011_s2 + $0x78] sm:$0xff] }
  0x6a   :  { %295 = vrot.lane.b32.xlu0 %v287_v44, %s592_s30  ;;  %v230_v44 = vsel %vm86_vm0, %v228_v38, %v229_v42  ;;  %vm302_vm0 = vcmask 522624   ;;  %446 = vmatpush.msra.mxu2 %v445_v11 }
  0x6b   :  { %238 = vst.msk [vmem:[#allocation2 + $0x28] sm:$0xff] %vm65_vm4, %v230_v44  ;;  %466 = vmatpush.msra.mxu3 %v445_v11 }
  0x6c   :  { %447 = vmatpush.msra.mxu2 %v444_v12 }
  0x6d   :  { %467 = vmatpush.msra.mxu3 %v444_v12 }
  0x6e   :  { %448 = vmatpush.msra.mxu2 %v443_v13 }
  0x6f   :  { %468 = vmatpush.msra.mxu3 %v443_v13  ;;  %v502_v13 = vld [vmem:[%s1014_s5] sm:$0x1] }
  0x70   :  { %v209_v22 = vpop.permute.xlu2 %208  ;;  %449 = vmatpush.msra.mxu2 %v442_v14 }
  0x71   :  { %469 = vmatpush.msra.mxu3 %v442_v14 }
  0x72   :  { %450 = vmatpush.msra.mxu2 %v441_v15 }
  0x73   :  { %470 = vmatpush.msra.mxu3 %v441_v15 }
  0x74   :  { %v70_v24 = vpop.permute.xlu0 %69  ;;  %451 = vmatpush.msra.mxu2 %v440_v16 }
  0x75   :  { %82 = vst.msk [vmem:[#allocation2] sm:$0xff] %vm81_vm6, %v70_v24  ;;  %471 = vmatpush.msra.mxu3 %v440_v16 }
  0x76   :  { %v122_v25 = vpop.permute.xlu1 %121  ;;  %452 = vmatpush.msra.mxu2 %v439_v17 }
  0x77   :  { %472 = vmatpush.msra.mxu3 %v439_v17 }
  0x78   :  { %v96_v28 = vpop.permute.xlu2 %95  ;;  %453 = vmatpush.msra.mxu2 %v438_v18 }
  0x79   :  { %473 = vmatpush.msra.mxu3 %v438_v18 }
  0x7a   :  { %454 = vmatpush.msra.mxu2 %v437_v19 }
  0x7b   :  { %474 = vmatpush.msra.mxu3 %v437_v19 }
  0x7c   :  { %v94_v29 = vpop.permute.xlu0 %93  ;;  %455 = vmatpush.msra.mxu2 %v436_v20 }
  0x7d   :  { %106 = vst.msk [vmem:[#allocation2] sm:$0xff] %vm105_vm8, %v94_v29  ;;  %475 = vmatpush.msra.mxu3 %v436_v20  ;;  %v430_v29 = vld [vmem:[%s1011_s2] sm:$0xff] }
  0x7e   :  { %134 = vst.msk [vmem:[#allocation2] sm:$0xfe] %vm133_vm9, %v122_v25  ;;  %v140_v30 = vpop.permute.xlu1 %139  ;;  %456 = vmatpush.msra.mxu2 %v435_v2  ;;  %v432_v25 = vld [vmem:[%s1011_s2 + $0x10] sm:$0xff] }
  0x7f   :  { %152 = vst.msk [vmem:[#allocation2] sm:$0xff] %vm151_vm10, %v140_v30  ;;  %476 = vmatpush.msra.mxu3 %v435_v2 }
  0x80   :  { %175 = vst.msk [vmem:[#allocation2] sm:$0xff] %vm174_vm11, %v801_v3  ;;  %v165_v31 = vpop.permute.xlu2 %164 }
  0x84   :  { %v191_v21 = vpop.permute.xlu0 %190 }
  0x85   :  { %203 = vst.msk [vmem:[#allocation2] sm:$0xfe] %vm202_vm12, %v191_v21 }
  0x86   :  { %221 = vst.msk [vmem:[#allocation2] sm:$0xff] %vm220_vm13, %v209_v22  ;;  %v268_v32 = vpop.permute.xlu1 %267  ;;  %v434_v22 = vld [vmem:[%s1011_s2 + $0x20] sm:$0xff] }
  0x87   :  { %279 = vst.msk [vmem:[#allocation2 + $0x8] sm:$0xff] %vm105_vm8, %v268_v32  ;;  %457 = vmatpush.msra.mxu2 %v434_v22  ;;  %477 = vmatpush.msra.mxu3 %v434_v22 }
  0x88   :  { %v270_v33 = vpop.permute.xlu2 %269 }
  0x89   :  { %458 = vmatpush.msra.mxu2 %v433_v0  ;;  %478 = vmatpush.msra.mxu3 %v433_v0 }
  0x8b   :  { %459 = vmatpush.msra.mxu2 %v432_v25  ;;  %479 = vmatpush.msra.mxu3 %v432_v25 }
  0x8c   :  { %v290_v34 = vpop.permute.xlu0 %289 }
  0x8d   :  { %301 = vst.msk [vmem:[#allocation2 + $0x8] sm:$0xff] %vm135_vm14, %v290_v34  ;;  %v306_v35 = vld [vmem:[#allocation2] sm:$0xff] }
  0x8e   :  { %v72_v36 = vpop.permute.xlu1 %71  ;;  %366 = vmatmul.f32.vlgmr.msra.gmra.mxu0 %v306_v35 }
  0x8f   :  { %83 = vst.msk [vmem:[#allocation2 + $0x10] sm:$0xff] %vm81_vm6, %v72_v36 }
  0x90   :  { %108 = vst.msk [vmem:[#allocation2 + $0x10] sm:$0x7f] %vm1016_vm15, %v96_v28  ;;  %v74_v37 = vpop.permute.xlu2 %73  ;;  %vm204_vm15 = vcmask 917248   ;;  %v431_v28 = vld [vmem:[%s1011_s2 + $0x8] sm:$0xff] }
  0x91   :  { %84 = vst.msk [vmem:[#allocation2 + $0x20] sm:$0xff] %vm81_vm6, %v74_v37  ;;  %460 = vmatpush.msra.mxu2 %v431_v28  ;;  %480 = vmatpush.msra.mxu3 %v431_v28 }
  0x93   :  { %461 = vmatpush.msra.mxu2 %v430_v29  ;;  %481 = vmatpush.msra.mxu3 %v430_v29 }
  0x94   :  { %v124_v40 = vpop.permute.xlu0 %123  ;;  %v307_v41 = vld [vmem:[#allocation2 + $0x8] sm:$0xff] }
  0x95   :  { %136 = vst.msk [vmem:[#allocation2 + $0x10] sm:$0xff] %vm135_vm14, %v124_v40  ;;  %575 = vmatmul.msk.f32.vlgmr.msra.gmra.mxu1 %vm24_vm3, %v307_v41 }
  0x96   :  { %v142_v43 = vpop.permute.xlu1 %141 }
  0x97   :  { %153 = vst.msk [vmem:[#allocation2 + $0x10] sm:$0xff] %vm151_vm10, %v142_v43 }
  0x98   :  { %177 = vst.msk [vmem:[#allocation2 + $0x10] sm:$0x7f] %vm176_vm2, %v165_v31  ;;  %v144_v45 = vpop.permute.xlu2 %143 }
  0x9c   :  { %v253_v39 = vpop.permute.xlu0 %252 }
  0x9d   :  { %264 = vst.msk [vmem:[#allocation2 + $0x18] sm:$0xff] %vm81_vm6, %v253_v39 }
  0x9e   :  { %v193_v47 = vpop.permute.xlu1 %192  ;;  %280 = vst.msk [vmem:[#allocation2 + $0x18] sm:$0xff] %vm105_vm8, %v270_v33 }
  0x9f   :  { %205 = vst.msk [vmem:[#allocation2 + $0x10] sm:$0xff] %vm204_vm15, %v193_v47 }
  0xa0   :  { %v195_v49 = vpop.permute.xlu2 %194 }
  0xa4   :  { %v211_v51 = vpop.permute.xlu0 %210 }
  0xa5   :  { %222 = vst.msk [vmem:[#allocation2 + $0x10] sm:$0xff] %vm220_vm13, %v211_v51 }
  0xa6   :  { %v292_v52 = vpop.permute.xlu1 %291 }
  0xa7   :  { %303 = vst.msk [vmem:[#allocation2 + $0x18] sm:$0x7f] %vm302_vm0, %v292_v52 }
  0xa8   :  { %v294_v53 = vpop.permute.xlu2 %293 }
  0xac   :  { %v98_v54 = vpop.permute.xlu0 %97  ;;  %v308_v55 = vld [vmem:[#allocation2 + $0x10] sm:$0xff] }
  0xad   :  { %109 = vst.msk [vmem:[#allocation2 + $0x20] sm:$0xff] %vm105_vm8, %v98_v54  ;;  %369 = vmatmul.f32.gmra.mxu0 %v308_v55 }
  0xae   :  { %v126_v27 = vpop.permute.xlu1 %125  ;;  %v309_v56 = vld [vmem:[#allocation2 + $0x18] sm:$0xff] }
  0xaf   :  { %137 = vst.msk [vmem:[#allocation2 + $0x20] sm:$0xfe] %vm133_vm9, %v126_v27  ;;  %576 = vmatmul.msk.f32.gmra.mxu1 %vm24_vm3, %v309_v56 }
  0xb0   :  { %154 = vst.msk [vmem:[#allocation2 + $0x20] sm:$0xff] %vm151_vm10, %v144_v45  ;;  %v128_v26 = vpop.permute.xlu2 %127 }
  0xb4   :  { %v167_v46 = vpop.permute.xlu0 %166 }
  0xb5   :  { %178 = vst.msk [vmem:[#allocation2 + $0x20] sm:$0xff] %vm174_vm11, %v167_v46 }
  0xb6   :  { %v255_v57 = vpop.permute.xlu1 %254  ;;  %206 = vst.msk [vmem:[#allocation2 + $0x20] sm:$0xfe] %vm202_vm12, %v195_v49 }
  0xb7   :  { %265 = vst.msk [vmem:[#allocation2 + $0x28] sm:$0xfe] %vm262_vm5, %v255_v57 }
  0xb8   :  { %v257_v58 = vpop.permute.xlu2 %256 }
  0xb9   :  { %266 = vst.msk [vmem:[#allocation2 + $0x38] sm:$0xff] %vm81_vm6, %v257_v58 }
  0xbc   :  { %v272_v59 = vpop.permute.xlu0 %271 }
  0xbd   :  { %281 = vst.msk [vmem:[#allocation2 + $0x28] sm:$0xff] %vm105_vm8, %v272_v59  ;;  %v505_v59 = vld [vmem:[%s1012_s3] sm:$0xff] }
  0xbe   :  { %v213_v60 = vpop.permute.xlu1 %212  ;;  %304 = vst.msk [vmem:[#allocation2 + $0x28] sm:$0xff] %vm135_vm14, %v294_v53  ;;  %525 = vmatpush.msrb.mxu2 %v505_v59  ;;  %548 = vmatpush.msrb.mxu3 %v505_v59 }
  0xbf   :  { %223 = vst.msk [vmem:[#allocation2 + $0x20] sm:$0xff] %vm220_vm13, %v213_v60 }
  0xc0   :  { %v215_v5 = vpop.permute.xlu2 %214 }
  0xc4   :  { %v76_v61 = vpop.permute.xlu0 %75 }
  0xc5   :  { %85 = vst.msk [vmem:[#allocation2 + $0x30] sm:$0xff] %vm81_vm6, %v76_v61  ;;  %v311_v62 = vld [vmem:[#allocation2 + $0x28] sm:$0xff]  ;;  %vm506_vm6 = vcmask 64512  }
  0xc6   :  { %v310_v63 = vld [vmem:[#allocation2 + $0x20] sm:$0xff]  ;;  %577 = vmatmul.msk.f32.gmra.mxu1 %vm24_vm3, %v311_v62  ;;  %v100_v1 = vpop.permute.xlu1 %99 }
  0xc7   :  { %372 = vmatmul.f32.gmra.mxu0 %v310_v63  ;;  %110 = vst.msk [vmem:[#allocation2 + $0x30] sm:$0x7f] %vm1017_vm1, %v100_v1 }
  0xc8   :  { %138 = vst.msk [vmem:[#allocation2 + $0x30] sm:$0xff] %vm135_vm14, %v128_v26 }
  0xcc   :  { %v146_v3 = vpop.permute.xlu0 %145 }
  0xcd   :  { %155 = vst.msk [vmem:[#allocation2 + $0x30] sm:$0xff] %vm151_vm10, %v146_v3 }
  0xce   :  { %v169_v4 = vpop.permute.xlu1 %168 }
  0xcf   :  { %179 = vst.msk [vmem:[#allocation2 + $0x30] sm:$0x7f] %vm176_vm2, %v169_v4 }
  0xd4   :  { %v197_v6 = vpop.permute.xlu0 %196 }
  0xd5   :  { %207 = vst.msk [vmem:[#allocation2 + $0x30] sm:$0xff] %vm204_vm15, %v197_v6 }
  0xd6   :  { %v274_v7 = vpop.permute.xlu1 %273  ;;  %224 = vst.msk [vmem:[#allocation2 + $0x30] sm:$0xff] %vm220_vm13, %v215_v5 }
  0xd7   :  { %282 = vst.msk [vmem:[#allocation2 + $0x38] sm:$0xff] %vm105_vm8, %v274_v7 }
  0xdc   :  { %v296_v8 = vpop.permute.xlu0 %295 }
  0xdd   :  { %305 = vst.msk [vmem:[#allocation2 + $0x38] sm:$0x7f] %vm302_vm0, %v296_v8  ;;  %v312_v9 = vld [vmem:[#allocation2 + $0x30] sm:$0xff] }
  0xde   :  { %375 = vmatmul.f32.gmra.mxu0 %v312_v9 }
  0xe4   :  { %v313_v10 = vld [vmem:[#allocation2 + $0x38] sm:$0xff] }
  0xe5   :  { %578 = vmatmul.msk.f32.gmra.mxu1 %vm24_vm3, %v313_v10  ;;  %v489_v10 = vld [vmem:[%s1013_s4] sm:$0x1] }
 0x10b   :  { %v367_v23 = vpop.f32.mrf.mxu0 }
 0x112   :  { %v396_v24 = vpop.f32.mrf.mxu1 }
 0x113   :  { %v397_v34 = vadd.f32 %v396_v24, %v367_v23 }
 0x115   :  { %v417_v38 = vmul.f32 %v397_v34, %v397_v34 }
 0x12a   :  { %v370_v30 = vpop.f32.mrf.mxu0 }
 0x12c   :  { %v399_v31 = vpop.f32.mrf.mxu1 }
 0x12d   :  { %v976_v33 = vadd.f32 %v399_v31, %v370_v30 }
 0x12f   :  { %v418_v36 = vmul.f32 %v976_v33, %v976_v33  ;;  %v408_v40 = vadd.f32 %v976_v33, %v397_v34 }
 0x131   :  { %v421_v43 = vadd.f32 %v418_v36, %v417_v38 }
 0x143   :  { %v402_v32 = vpop.f32.mrf.mxu1 }
 0x144   :  { %v373_v21 = vpop.f32.mrf.mxu0 }
 0x145   :  { %v978_v35 = vadd.f32 %v402_v32, %v373_v21 }
 0x147   :  { %v419_v41 = vmul.f32 %v978_v35, %v978_v35  ;;  %v409_v44 = vadd.f32 %v408_v40, %v978_v35 }
 0x149   :  { %v422_v39 = vadd.f32 %v421_v43, %v419_v41 }
 0x15b   :  { %v376_v37 = vpop.f32.mrf.mxu0 }
 0x162   :  { %v405_v42 = vpop.f32.mrf.mxu1 }
 0x163   :  { %v406_v45 = vadd.f32 %v405_v42, %v376_v37 }
 0x165   :  { %v410_v47 = vadd.f32 %v409_v44, %v406_v45  ;;  %v420_v48 = vmul.f32 %v406_v45, %v406_v45 }
 0x167   :  { %v411_v49 = vrot.slane %v410_v47, 4  ;;  %v423_v50 = vadd.f32 %v422_v39, %v420_v48 }
 0x169   :  { %v412_v51 = vadd.f32 %v411_v49, %v410_v47  ;;  %v424_v52 = vrot.slane %v423_v50, 4 }
 0x16b   :  { %v413_v53 = vrot.slane %v412_v51, 2  ;;  %v425_v54 = vadd.f32 %v424_v52, %v423_v50 }
 0x16d   :  { %v414_v55 = vadd.f32 %v413_v53, %v412_v51  ;;  %v426_v27 = vrot.slane %v425_v54, 2 }
 0x16f   :  { %v415_v56 = vrot.slane %v414_v55, 1  ;;  %v427_v26 = vadd.f32 %v426_v27, %v425_v54 }
 0x171   :  { %v416_v46 = vadd.f32 %v415_v56, %v414_v55  ;;  %v428_v57 = vrot.slane %v427_v26, 1 }
 0x173   :  { %462 = vmatmul.f32.vlgmr.msra.gmra.mxu2 %v416_v46  ;;  %v429_v58 = vadd.f32 %v428_v57, %v427_v26 }
 0x175   :  { %482 = vmatmul.f32.vlgmr.msra.gmra.mxu3 %v429_v58 }
 0x1f6   :  { %v463_v60 = vpop.f32.mrf.mxu2 }
 0x1f7   :  { %v486_v61 = vmul.f32 %v463_v60, %v463_v60 }
 0x1f8   :  { %v483_v62 = vpop.f32.mrf.mxu3 }
 0x1f9   :  { %v487_v63 = vsub.f32 %v483_v62, %v486_v61 }
 0x1fb   :  { %v488_v1 = vmax.f32 %v487_v63, 0.0 }
 0x1fd   :  { %v490_v3 = vadd.f32 1e-05, %v488_v1 }
 0x1ff   :  { %589 = vrsqrt.f32 %v490_v3  ;;  %vm497_vm4 = vweird.f32 %v490_v3 }
 0x205   :  { %v590_v4 = vpop.eup %589 }
 0x206   :  { %v492_v5 = vmul.f32 %v590_v4, %v490_v3  ;;  %vm498_vm3 = vweird.f32 %v590_v4 }
 0x207   :  { %vm499_vm5 = vmor %vm497_vm4, %vm498_vm3 }
 0x208   :  { %v493_v6 = vmul.f32 %v590_v4, %v492_v5 }
 0x20a   :  { %v494_v7 = vmul.f32 0.5, %v493_v6 }
 0x20c   :  { %v495_v8 = vsub.f32 1.5, %v494_v7 }
 0x20e   :  { %v496_v9 = vmul.f32 %v590_v4, %v495_v8 }
 0x210   :  { %v500_v11 = vsel %vm499_vm5, %v590_v4, %v496_v9 }
 0x211   :  { %v501_v12 = vmul.f32 %v500_v11, %v489_v10 }
 0x213   :  { %579 = vmatmul.msk.f32.vlgmr.msrb.gmra.mxu2 %vm506_vm6, %v501_v12  ;;  %v503_v14 = vmul.f32 %v501_v12, %v463_v60 }
 0x215   :  { %v504_v15 = vsub.f32 %v502_v13, %v503_v14 }
 0x217   :  { %580 = vmatmul.msk.f32.vlgmr.msrb.gmra.mxu3 %vm506_vm6, %v504_v15 }
 0x296   :  { %v527_v16 = vpop.f32.mrf.mxu2 }
 0x297   :  { %v553_v17 = vperm.slane %v527_v16, 0 }
 0x299   :  { %v554_v18 = vmul.f32 %v553_v17, %v397_v34  ;;  %v555_v20 = vmul.f32 %v553_v17, %v976_v33  ;;  %v556_v2 = vmul.f32 %v553_v17, %v978_v35  ;;  %v557_v22 = vmul.f32 %v553_v17, %v406_v45 }
 0x29a   :  { %v550_v19 = vpop.f32.mrf.mxu3 }
 0x29b   :  { %v558_v23 = vperm.slane %v550_v19, 0 }
 0x29d   :  { %v559_v0 = vadd.f32 %v558_v23, %v554_v18  ;;  %v560_v24 = vadd.f32 %v558_v23, %v555_v20  ;;  %v561_v25 = vadd.f32 %v558_v23, %v556_v2  ;;  %v562_v28 = vadd.f32 %v558_v23, %v557_v22 }
 0x29f   :  { %v563_v29 = vmax.f32 %v559_v0, 0.0  ;;  %v564_v30 = vmax.f32 %v560_v24, 0.0  ;;  %v565_v31 = vmax.f32 %v561_v25, 0.0  ;;  %v566_v21 = vmax.f32 %v562_v28, 0.0 }
 0x2a1   :  { %567 = vst [vmem:[%s1015_s6] sm:$0xff] %v563_v29 }
 0x2a2   :  { %568 = vst [vmem:[%s1015_s6 + $0x8] sm:$0xff] %v564_v30 }
 0x2a3   :  { %569 = vst [vmem:[%s1015_s6 + $0x10] sm:$0xff] %v565_v31 }
 0x2a4   :  { %570 = vst [vmem:[%s1015_s6 + $0x18] sm:$0xff] %v566_v21 }

</bundles_post_ra>
